<compile_context>
chip_gen: v5e
topology: v5e:2x2
jax: 0.10.0
libtpu: 0.0.40
codegen_flags: <defaults>
</compile_context>

<pallas_src>
import functools

import jax
import jax.numpy as jnp
from jax.experimental import pallas as pl
from jax.experimental.pallas import tpu as pltpu


# ---------------------------------------------------------------------------
# Kernels
# ---------------------------------------------------------------------------

def _rmsnorm_kernel(x_ref, w_ref, o_ref, *, eps):
    """Plain RMSNorm; block layout (rows, H) with H on lanes."""
    x = x_ref[...].astype(jnp.float32)                # (tm, H) f32   VPU
    var = jnp.mean(x * x, axis=-1, keepdims=True)     # (tm, 1)       XLU reduce
    inv = jax.lax.rsqrt(var + eps)                    # (tm, 1)       EUP
    y = w_ref[...].astype(jnp.float32) * (x * inv)    # f32 multiply (as in module)
    o_ref[...] = y.astype(o_ref.dtype)


def _rmsnorm_folded_kernel(x_ref, w_ref, s_ref, o_ref, *, eps, inv_h):
    """Lane-folded RMSNorm for H < 128.

    Each block row holds `fold` original rows (last dim = fold*H = 128 lanes).
    The per-original-row sum of squares is a segmented lane reduction, done as
    a small MXU matmul with the block-diagonal ones matrix `s_ref`, so every
    load/store stays lane-dense and no masked partial stores are emitted.
    """
    x = x_ref[...].astype(jnp.float32)                          # (tm, L)
    sumsq = jnp.dot(x * x, s_ref[...],                          # (tm, L): each lane
                    preferred_element_type=jnp.float32)         #  gets its group sum
    inv = jax.lax.rsqrt(sumsq * inv_h + eps)                    # (tm, L)
    y = w_ref[...].astype(jnp.float32) * (x * inv)
    o_ref[...] = y.astype(o_ref.dtype)


# ---------------------------------------------------------------------------
# Sizing helpers
# ---------------------------------------------------------------------------

def _sublane_pack(dtype) -> int:
    # Rows per packed vreg tile: f32 -> 8, bf16/f16 -> 16, int8/fp8 -> 32.
    itemsize = jnp.dtype(dtype).itemsize
    return max(8, 8 * (4 // max(1, itemsize)))


def _vmem_budget_bytes() -> int:
    """Per-kernel VMEM budget (scoped limit upper bound)."""
    cap = None
    try:
        cap = int(pltpu.get_tpu_info().vmem_capacity_bytes)
    except Exception:
        cap = None
    kind = ""
    try:
        kind = jax.devices()[0].device_kind.lower()
    except Exception:
        pass
    if cap is None or cap <= 0:
        cap = 64 << 20                      # conservative (v7x per-TC) default
    if "v7" in kind:
        # v7x has 64 MiB per TensorCore; the query may report per-chip capacity.
        cap = min(cap, 64 << 20)
    # Use at most half of physical VMEM (compiler scratch / padding headroom):
    # 64 MiB scoped on 128 MiB parts (v5e/v6e), 32 MiB on v7x.
    return int(min(cap // 2, 64 << 20))


def _choose_tm(m, pack, tm_max):
    """Row-tile size: as large as `tm_max` allows, but if everything would fit
    in a single block, split into a few steps anyway so v7x's two TensorCores
    (dimension_semantics=("parallel",)) both get work and the DMA pipeline has
    something to overlap."""
    tm = max(pack, (min(tm_max, m) // pack) * pack)
    if tm < m:
        return tm
    for steps in (4, 2):
        cand = ((m // steps) // pack) * pack
        if cand >= pack:
            return cand
    return m  # too small to split below the sublane packing


# ---------------------------------------------------------------------------
# Wrapper
# ---------------------------------------------------------------------------

def grok_rms_norm(hidden_states, weight, eps=1e-6, *, target_tile_bytes=4 << 20):
    """RMSNorm over the last axis of `hidden_states` using a Pallas TPU kernel."""
    orig_shape = hidden_states.shape
    orig_dtype = hidden_states.dtype
    H = orig_shape[-1]

    x2d = hidden_states.reshape(-1, H)
    M = x2d.shape[0]

    in_bytes = jnp.dtype(orig_dtype).itemsize
    w_bytes = jnp.dtype(weight.dtype).itemsize
    pack = _sublane_pack(orig_dtype)
    budget = _vmem_budget_bytes()

    # ---- lane-dense layout: fold rows into lanes when H < 128 ---------------
    fold = 1
    if H < 128 and 128 % H == 0 and M % (128 // H) == 0:
        fold = 128 // H
    L = fold * H            # last (lane) dim of the kernel blocks
    Mf = M // fold          # rows of the 2-D slab the kernel sees

    if fold > 1:
        x_slab = x2d.reshape(Mf, L)                      # metadata-only reshape
        w_slab = jnp.tile(weight.reshape(-1), fold).reshape(1, L)
        seg = jnp.arange(L, dtype=jnp.int32) // H
        s_mat = (seg[:, None] == seg[None, :]).astype(jnp.float32)   # (L, L)
        # Per folded row: double-buffered in + out tiles, plus ~3 f32 temps
        # (upcast, matmul result, product) that live in VMEM, not vregs.
        bytes_per_row = 4 * in_bytes * L + 12 * L
        fixed_bytes = 2 * L * w_bytes + 2 * L * L * 4
    else:
        x_slab = x2d
        w_slab = weight.reshape(1, L)
        s_mat = None
        # Per row: double-buffered in + out tiles, plus ~2 f32 temps
        # (upcast and weighted product) live across the reduction.
        bytes_per_row = 4 * in_bytes * L + 8 * L
        fixed_bytes = 2 * L * w_bytes

    # ---- row tile: target a few-MiB input DMA buffer, clamp to VMEM budget --
    tm_target = max(pack, target_tile_bytes // max(1, in_bytes * L))
    tm_budget = max(pack, (budget * 4 // 5 - fixed_bytes) // max(1, bytes_per_row))
    tm = _choose_tm(Mf, pack, min(tm_target, tm_budget))
    grid = (pl.cdiv(Mf, tm),)

    usage = tm * bytes_per_row + fixed_bytes
    vmem_limit = int(min(budget, max(usage + usage // 4 + (1 << 20), 16 << 20)))

    if fold > 1:
        kernel = functools.partial(_rmsnorm_folded_kernel, eps=float(eps), inv_h=1.0 / H)
        in_specs = [
            pl.BlockSpec((tm, L), lambda i: (i, 0)),   # activations
            pl.BlockSpec((1, L), lambda i: (0, 0)),    # weight (VMEM-resident)
            pl.BlockSpec((L, L), lambda i: (0, 0)),    # segment-sum matrix (resident)
        ]
        args = (x_slab, w_slab, s_mat)
    else:
        kernel = functools.partial(_rmsnorm_kernel, eps=float(eps))
        in_specs = [
            pl.BlockSpec((tm, L), lambda i: (i, 0)),   # activations
            pl.BlockSpec((1, L), lambda i: (0, 0)),    # weight (VMEM-resident)
        ]
        args = (x_slab, w_slab)

    # TODO(synk): H >= 128 with H % 128 != 0 still uses masked stores on the
    # last lane tile; a padding/folding path for that case is not implemented.
    out = pl.pallas_call(
        kernel,
        out_shape=jax.ShapeDtypeStruct((Mf, L), orig_dtype),
        grid_spec=pltpu.PrefetchScalarGridSpec(
            num_scalar_prefetch=0,
            grid=grid,
            in_specs=in_specs,
            out_specs=pl.BlockSpec((tm, L), lambda i: (i, 0)),
        ),
        compiler_params=pltpu.CompilerParams(
            dimension_semantics=("parallel",),   # rows independent; shards TCs on v7x
            vmem_limit_bytes=vmem_limit,
        ),
    )(*args)

    return out.reshape(orig_shape)


# ---------------------------------------------------------------------------
# Demo / self-test
# ---------------------------------------------------------------------------

if __name__ == "__main__":
    key = jax.random.PRNGKey(0)

    batch, seq, hidden = 2, 8, 32
    x = jax.random.normal(key, (batch, seq, hidden), dtype=jnp.bfloat16)

    # Module init: weight = torch.ones(hidden_size, dtype=float32).
    weight = jnp.ones((hidden,), dtype=jnp.float32)
    eps = 1e-6

    y = grok_rms_norm(x, weight, eps)
    y = jax.block_until_ready(y)

    # Pure-JAX reference (same math as the PyTorch forward).
    xf = x.astype(jnp.float32)
    var = jnp.mean(xf * xf, axis=-1, keepdims=True)
    ref = (weight * (xf * jax.lax.rsqrt(var + eps))).astype(x.dtype)

    assert y.shape == x.shape and y.dtype == x.dtype
    assert jnp.allclose(y.astype(jnp.float32), ref.astype(jnp.float32),
                        atol=1e-2, rtol=1e-2)

    print("KERNEL_OK")
</pallas_src>

<mosaic_0001>
module attributes {stable_mosaic.version = 11 : i64} {
  func.func @_rmsnorm_folded_kernel(%arg0: i32, %arg1: memref<4x128xbf16, #tpu.memory_space<vmem>>, %arg2: memref<1x128xf32, #tpu.memory_space<vmem>>, %arg3: memref<128x128xf32, #tpu.memory_space<vmem>>, %arg4: memref<4x128xbf16, #tpu.memory_space<vmem>>) attributes {dimension_semantics = [#tpu.dimension_semantics<parallel>], iteration_bounds = array<i64: 1>, scalar_prefetch = 0 : i64, scratch_operands = 0 : i64, tpu.core_type = #tpu.core_type<tc>, window_params = [{transform_indices = @transform_0, window_bounds = array<i64: 4, 128>}, {pipeline_mode = #tpu.pipeline_mode<synchronous>, transform_indices = @transform_1, window_bounds = array<i64: 1, 128>}, {pipeline_mode = #tpu.pipeline_mode<synchronous>, transform_indices = @transform_2, window_bounds = array<i64: 128, 128>}, {transform_indices = @transform_3, window_bounds = array<i64: 4, 128>}]} {
    %c0 = arith.constant 0 : index
    %c0_0 = arith.constant 0 : index
    %0 = vector.load %arg1[%c0, %c0_0] : memref<4x128xbf16, #tpu.memory_space<vmem>>, vector<4x128xbf16>
    %1 = arith.extf %0 : vector<4x128xbf16> to vector<4x128xf32>
    %2 = arith.mulf %1, %1 : vector<4x128xf32>
    %c0_1 = arith.constant 0 : index
    %c0_2 = arith.constant 0 : index
    %3 = vector.load %arg3[%c0_1, %c0_2] : memref<128x128xf32, #tpu.memory_space<vmem>>, vector<128x128xf32>
    %cst = arith.constant dense<0.000000e+00> : vector<4x128xf32>
    %4 = tpu.matmul %2, %3, %cst {dimension_numbers = #tpu.dot_dimension_numbers<[1], [0], [0], [1], [0, 0, 1, 1], [], []>} : vector<4x128xf32>, vector<128x128xf32>, vector<4x128xf32> -> vector<4x128xf32>
    %cst_3 = arith.constant 3.125000e-02 : f32
    %5 = vector.broadcast %cst_3 : f32 to vector<4x128xf32>
    %6 = arith.mulf %4, %5 : vector<4x128xf32>
    %cst_4 = arith.constant 9.99999997E-7 : f32
    %7 = vector.broadcast %cst_4 : f32 to vector<4x128xf32>
    %8 = arith.addf %6, %7 : vector<4x128xf32>
    %9 = math.rsqrt %8 : vector<4x128xf32>
    %c0_5 = arith.constant 0 : index
    %c0_6 = arith.constant 0 : index
    %10 = vector.load %arg2[%c0_5, %c0_6] : memref<1x128xf32, #tpu.memory_space<vmem>>, vector<1x128xf32>
    %11 = arith.mulf %1, %9 : vector<4x128xf32>
    %12 = vector.broadcast %10 : vector<1x128xf32> to vector<4x128xf32>
    %13 = arith.mulf %12, %11 : vector<4x128xf32>
    %14 = arith.truncf %13 : vector<4x128xf32> to vector<4x128xbf16>
    %c0_7 = arith.constant 0 : index
    %c0_8 = arith.constant 0 : index
    %15 = vector.load %arg4[%c0_7, %c0_8] : memref<4x128xbf16, #tpu.memory_space<vmem>>, vector<4x128xbf16>
    tpu.vector_store %arg4[%c0_7, %c0_8], %14 {strides = array<i32>} : memref<4x128xbf16, #tpu.memory_space<vmem>>, vector<4x128xbf16>,
    return
  }
  func.func @transform_0(%arg0: i32) -> (i32, i32) {
    %c0_i32 = arith.constant 0 : i32
    %c0_i32_0 = arith.constant 0 : i32
    return %arg0, %c0_i32 : i32, i32
  }
  func.func @transform_1(%arg0: i32) -> (i32, i32) {
    %c0_i32 = arith.constant 0 : i32
    %c0_i32_0 = arith.constant 0 : i32
    %c0_i32_1 = arith.constant 0 : i32
    return %c0_i32, %c0_i32_0 : i32, i32
  }
  func.func @transform_2(%arg0: i32) -> (i32, i32) {
    %c0_i32 = arith.constant 0 : i32
    %c0_i32_0 = arith.constant 0 : i32
    %c0_i32_1 = arith.constant 0 : i32
    return %c0_i32, %c0_i32_0 : i32, i32
  }
  func.func @transform_3(%arg0: i32) -> (i32, i32) {
    %c0_i32 = arith.constant 0 : i32
    %c0_i32_0 = arith.constant 0 : i32
    return %arg0, %c0_i32 : i32, i32
  }
}

</mosaic_0001>

<bundles_post_ra>
// kernel: tpu_custom_call.1
= control target key start
LH: loop header
LB: loop body
LE: loop exit
PB: predicated region body
PF: predicated region fallthrough
CT: control target
= control target key end

     0   :  { %8 = vsyncpa [#allocation3], 0  ;;  %s284_s0 = inlined_call_operand.hbm [shape: bf16[4,128], index: 0, kind: input, shape index: {}]   ;;  %s285_s1 = inlined_call_operand.hbm [shape: f32[1,128], index: 1, kind: input, shape index: {}]   ;;  %s286_s2 = inlined_call_operand.hbm [shape: f32[128,128], index: 2, kind: input, shape index: {}]   ;;  %s287_s3 = inlined_call_operand.hbm [shape: bf16[4,128], index: 3, kind: output, shape index: {}]  }
   0x1   :  { %9 = vsyncpa [#allocation6], 0  ;;  %s27_s14 = sshll.u32 %s285_s1, 4  ;;  %s28_s14 = int_to_ptr.hbm [resolvable:$true] %s27_s14 }
   0x2   :  { %10 = vsyncpa [#allocation4], 0  ;;  %s246_s15 = smov [#allocation5]   ;;  %s16_s19 = sshll.u32 %s284_s0, 4  ;;  %s17_s19 = int_to_ptr.hbm [resolvable:$true] %s16_s19 }
   0x3   :  { %s29_s16 = sshll.u32 %s246_s15, 4  ;;  %s247_s20 = smov [#allocation2]   ;;  %s30_s16 = int_to_ptr.vmem [resolvable:$true] %s29_s16 }
   0x4   :  { %32 = dma.hbm_to_vmem [thread:$0]  %s28_s14, 16, %s30_s16, [#allocation6]  }
   0x5   :  { %s18_s21 = sshll.u32 %s247_s20, 4  ;;  %s37_s24 = sshll.u32 %s286_s2, 4  ;;  %s19_s21 = int_to_ptr.vmem [resolvable:$true] %s18_s21  ;;  %s38_s24 = int_to_ptr.hbm [resolvable:$true] %s37_s24 }
   0x6   :  { %21 = dma.hbm_to_vmem [thread:$0]  %s17_s19, 32, %s19_s21, [#allocation3]  }
   0x7   :  { %s248_s1 = smov [#allocation7]   ;;  %s249_s26 = smov 128  }
   0x8   :  { %s39_s25 = sshll.u32 %s248_s1, 4  ;;  %s250_s27 = smov 8   ;;  %s40_s25 = int_to_ptr.vmem [resolvable:$true] %s39_s25 }
   0x9   :  { %45 = dma.hbm_to_vmem [thread:$0]  %s38_s24, 2048, %s40_s25, [#allocation6], %s249_s26, %s249_s26, %s250_s27  }
   0xa   :  { %240 = dma.done.wait [#allocation3], 32  }
   0xb   :  { %241 = vsyncadd [#allocation3], 4294967264 }
   0xc   :  { %242 = dma.done.wait [#allocation6], 2064  }
   0xd   :  { %243 = vsyncadd [#allocation6], 4294965232  ;;  %v76_v0 = vld [vmem:[#allocation7 + $0x78] sm:$0xff]  ;;  %v75_v1 = vld [vmem:[#allocation7 + $0x70] sm:$0xff]  ;;  %s251_s0 = smov [#allocation8]   ;;  %s124_s30 = sshll.u32 %s287_s3, 4  ;;  %s125_s30 = int_to_ptr.hbm [resolvable:$true] %s124_s30 }
   0xe   :  { %77 = vmatpush.msra.mxu0 %v76_v0  ;;  %v74_v2 = vld [vmem:[#allocation7 + $0x68] sm:$0xff]  ;;  %v73_v3 = vld [vmem:[#allocation7 + $0x60] sm:$0xff]  ;;  %v72_v4 = vld [vmem:[#allocation7 + $0x58] sm:$0xff]  ;;  %s122_s2 = sshll.u32 %s251_s0, 4  ;;  %s123_s2 = int_to_ptr.vmem [resolvable:$true] %s122_s2 }
   0xf   :  { %v71_v5 = vld [vmem:[#allocation7 + $0x50] sm:$0xff]  ;;  %v70_v6 = vld [vmem:[#allocation7 + $0x48] sm:$0xff]  ;;  %v69_v7 = vld [vmem:[#allocation7 + $0x40] sm:$0xff] }
  0x10   :  { %78 = vmatpush.msra.mxu0 %v75_v1  ;;  %v68_v8 = vld [vmem:[#allocation7 + $0x38] sm:$0xff]  ;;  %v67_v9 = vld [vmem:[#allocation7 + $0x30] sm:$0xff]  ;;  %v66_v10 = vld [vmem:[#allocation7 + $0x28] sm:$0xff] }
  0x11   :  { %v65_v11 = vld [vmem:[#allocation7 + $0x20] sm:$0xff]  ;;  %v58_v12 = vld [vmem:[#allocation2] sm:$0x3]  ;;  %v63_v14 = vld [vmem:[#allocation7 + $0x10] sm:$0xff] }
  0x12   :  { %79 = vmatpush.msra.mxu0 %v74_v2  ;;  %v64_v13 = vld [vmem:[#allocation7 + $0x18] sm:$0xff]  ;;  %v59_v15 = vunpack.c.l.bf16 %v58_v12  ;;  %v62_v16 = vld [vmem:[#allocation7 + $0x8] sm:$0xff]  ;;  %v61_v17 = vld [vmem:[#allocation7] sm:$0xff] }
  0x13   :  { %v141_v28 = vld [vmem:[#allocation5] ss:$0 sm:$0xff] }
  0x14   :  { %80 = vmatpush.msra.mxu0 %v73_v3  ;;  %v60_v18 = vmul.f32 %v59_v15, %v59_v15 }
  0x16   :  { %81 = vmatpush.msra.mxu0 %v72_v4 }
  0x18   :  { %82 = vmatpush.msra.mxu0 %v71_v5 }
  0x1a   :  { %83 = vmatpush.msra.mxu0 %v70_v6 }
  0x1c   :  { %84 = vmatpush.msra.mxu0 %v69_v7 }
  0x1e   :  { %85 = vmatpush.msra.mxu0 %v68_v8 }
  0x20   :  { %86 = vmatpush.msra.mxu0 %v67_v9 }
  0x22   :  { %87 = vmatpush.msra.mxu0 %v66_v10 }
  0x24   :  { %88 = vmatpush.msra.mxu0 %v65_v11 }
  0x26   :  { %89 = vmatpush.msra.mxu0 %v64_v13 }
  0x28   :  { %90 = vmatpush.msra.mxu0 %v63_v14 }
  0x2a   :  { %91 = vmatpush.msra.mxu0 %v62_v16 }
  0x2c   :  { %92 = vmatpush.msra.mxu0 %v61_v17 }
  0x2d   :  { %93 = vmatmul.f32.vlgmr.msra.gmra.mxu0 %v60_v18 }
  0xaa   :  { %v94_v19 = vpop.f32.mrf.mxu0 }
  0xab   :  { %v97_v20 = vmul.f32 0.03125, %v94_v19 }
  0xad   :  { %v98_v21 = vadd.f32 1e-06, %v97_v20 }
  0xaf   :  { %142 = vrsqrt.f32 %v98_v21  ;;  %vm105_vm1 = vweird.f32 %v98_v21 }
  0xb5   :  { %v143_v22 = vpop.eup %142 }
  0xb6   :  { %v100_v23 = vmul.f32 %v143_v22, %v98_v21  ;;  %vm106_vm0 = vweird.f32 %v143_v22 }
  0xb7   :  { %vm107_vm2 = vmor %vm105_vm1, %vm106_vm0 }
  0xb8   :  { %v101_v24 = vmul.f32 %v143_v22, %v100_v23 }
  0xba   :  { %v102_v25 = vmul.f32 0.5, %v101_v24 }
  0xbc   :  { %v103_v26 = vsub.f32 1.5, %v102_v25 }
  0xbe   :  { %v104_v27 = vmul.f32 %v143_v22, %v103_v26 }
  0xc0   :  { %v108_v29 = vsel %vm107_vm2, %v143_v22, %v104_v27 }
  0xc1   :  { %v110_v30 = vmul.f32 %v108_v29, %v59_v15 }
  0xc3   :  { %v114_v31 = vmul.f32 %v141_v28, %v110_v30 }
  0xc5   :  { %v115_v32 = vpack.c.bf16 %v114_v31, %v114_v31 }
  0xc7   :  { %116 = vst [vmem:[#allocation8] sm:$0x3] %v115_v32 }
  0xc8   :  { %127 = dma.vmem_to_hbm [thread:$0]  %s123_s2, 32, %s125_s30, [#allocation4]  }
  0xc9   :  { %244 = dma.done.wait [#allocation4], 32  }
  0xca   :  { %245 = vsyncadd [#allocation4], 4294967264 }
  0xcb   :  { %132 = vsyncpa [#allocation3], 1 }
  0xcc   :  { %133 = vsyncpa [#allocation6], 1 }
  0xcd   :  { %134 = vsyncpa [#allocation4], 1 }

</bundles_post_ra>
